<compile_context>
chip_gen: v7x
topology: tpu7x:2x2x1
jax: 0.10.0
libtpu: 0.0.40
codegen_flags: <defaults>
</compile_context>

<pallas_src>
import functools

import jax
import jax.numpy as jnp
import numpy as np
from jax.experimental import pallas as pl
from jax.experimental.pallas import tpu as pltpu


def _round_up(x, m):
    return (x + m - 1) // m * m


# -----------------------------------------------------------------------------
# Fused kernel: 3x3 conv (as 9 shifted matmuls) + folded-BN bias + ReLU
#               + global-average-pool reduction + classifier head epilogue.
# Grid = (batch n, row-tile t).  t is the reduction axis (last, "arbitrary").
# -----------------------------------------------------------------------------
def fused_conv_gap_head_kernel(xt_ref, w_ref, bias_ref, wfc_ref, bfc_ref,
                               out_ref, acc_ref, *, hw_inv):
    # xt_ref : (1, 1, th+2, W+2, Cp)  halo row tile of padded NHWC input
    # w_ref  : (9, Cp, Coutp)         BN-scale-folded conv weights, one per tap
    # bias   : (1, Coutp)             folded conv+BN bias
    # wfc    : (Coutp, NCp)  bfc: (1, NCp)   lane-padded classifier head
    # out    : (1, 1, NCp)            logits (written on last row tile)
    # acc    : (1, Coutp) VMEM scratch, spatial-sum accumulator for GAP
    t = pl.program_id(1)

    @pl.when(t == 0)
    def _init():
        acc_ref[...] = jnp.zeros_like(acc_ref)

    th = xt_ref.shape[2] - 2
    w = xt_ref.shape[3] - 2
    cp = xt_ref.shape[4]

    # 3x3 "same" conv: in-kernel im2col via 9 shifted window loads of the VMEM
    # tile, each contracted on the MXU and accumulated in f32.
    conv = None
    for di in range(3):
        for dj in range(3):
            xs = xt_ref[0, 0, di:di + th, dj:dj + w, :].reshape(th * w, cp)
            part = jnp.dot(xs, w_ref[3 * di + dj],
                           preferred_element_type=jnp.float32)
            conv = part if conv is None else conv + part

    y = jnp.maximum(conv + bias_ref[...], 0.0)            # (th*w, Coutp)
    acc_ref[...] += jnp.sum(y, axis=0, keepdims=True)      # GAP partial sums

    @pl.when(t == pl.num_programs(1) - 1)
    def _epilogue():
        pooled = acc_ref[...] * hw_inv                      # (1, Coutp)
        out_ref[0] = (jnp.dot(pooled, wfc_ref[...],
                              preferred_element_type=jnp.float32)
                      + bfc_ref[...])


def timm_forward(x_nchw, params, *, row_tile=8):
    """Conv3x3+BN(eval)+ReLU -> GAP -> Linear, fused in one Pallas kernel."""
    N, Cin, H, W = x_nchw.shape
    w_conv = params["w_conv"]                      # [Cout, Cin, 3, 3] (OIHW)
    Cout = w_conv.shape[0]
    NC = params["w_fc"].shape[1]

    LANE, SUB = 128, 8
    Cp = _round_up(Cin, SUB)          # pad input channels (sublane friendly)
    Coutp = _round_up(Cout, LANE)     # lane-dense conv output / MXU columns
    NCp = _round_up(NC, LANE)         # lane-dense logits

    th = min(row_tile, H)
    while H % th:
        th -= 1
    n_t = H // th
    Wp = W + 2

    # ---- cheap glue (O(input) bytes): NCHW->NHWC, zero-pad channels+spatial,
    #      build overlapping halo row tiles (only 2 duplicated rows per tile).
    x_nhwc = jnp.transpose(x_nchw, (0, 2, 3, 1))
    xpad = jnp.pad(x_nhwc, ((0, 0), (1, 1), (1, 1), (0, Cp - Cin)))
    xt = jnp.stack([xpad[:, t * th:t * th + th + 2] for t in range(n_t)],
                   axis=1)                          # [N, n_t, th+2, Wp, Cp]

    # ---- fold BatchNorm(eval) into conv weight/bias; lane-pad everything ----
    eps = 1e-5
    inv_std = 1.0 / jnp.sqrt(params["bn_var"] + eps)
    scale = params["bn_gamma"] * inv_std                                # [Cout]
    bias = params["bn_beta"] + (params["b_conv"] - params["bn_mean"]) * scale
    w_taps = jnp.transpose(w_conv, (2, 3, 1, 0)) * scale                # [3,3,Cin,Cout]
    w_taps = jnp.pad(w_taps, ((0, 0), (0, 0), (0, Cp - Cin), (0, Coutp - Cout)))
    w_taps = w_taps.reshape(9, Cp, Coutp)
    bias_p = jnp.pad(bias, (0, Coutp - Cout)).reshape(1, Coutp)
    wfc_p = jnp.pad(params["w_fc"], ((0, Coutp - Cout), (0, NCp - NC)))
    bfc_p = jnp.pad(params["b_fc"], (0, NCp - NC)).reshape(1, NCp)

    kernel = functools.partial(fused_conv_gap_head_kernel, hw_inv=1.0 / (H * W))

    out = pl.pallas_call(
        kernel,
        out_shape=jax.ShapeDtypeStruct((N, 1, NCp), jnp.float32),
        grid_spec=pltpu.PrefetchScalarGridSpec(
            num_scalar_prefetch=0,
            grid=(N, n_t),
            in_specs=[
                pl.BlockSpec((1, 1, th + 2, Wp, Cp),
                             lambda n, t: (n, t, 0, 0, 0)),
                pl.BlockSpec((9, Cp, Coutp), lambda n, t: (0, 0, 0)),
                pl.BlockSpec((1, Coutp), lambda n, t: (0, 0)),
                pl.BlockSpec((Coutp, NCp), lambda n, t: (0, 0)),
                pl.BlockSpec((1, NCp), lambda n, t: (0, 0)),
            ],
            out_specs=pl.BlockSpec((1, 1, NCp), lambda n, t: (n, 0, 0)),
            scratch_shapes=[pltpu.VMEM((1, Coutp), jnp.float32)],
        ),
        compiler_params=pltpu.CompilerParams(
            # batch axis parallel (2 TCs on v7x); row-tile reduction arbitrary.
            dimension_semantics=("parallel", "arbitrary")),
    )(xt, w_taps, bias_p, wfc_p, bfc_p)

    return out.reshape(N, NCp)[:, :NC]


def _reference_forward(x_nchw, params):
    """Pure-JAX reference for numerical validation."""
    eps = 1e-5
    y = jax.lax.conv_general_dilated(
        x_nchw, params["w_conv"], window_strides=(1, 1), padding="SAME",
        dimension_numbers=("NCHW", "OIHW", "NCHW"))
    y = y + params["b_conv"].reshape(1, -1, 1, 1)
    inv_std = 1.0 / jnp.sqrt(params["bn_var"] + eps)
    y = (y - params["bn_mean"].reshape(1, -1, 1, 1)) * (
        params["bn_gamma"] * inv_std).reshape(1, -1, 1, 1) \
        + params["bn_beta"].reshape(1, -1, 1, 1)
    y = jnp.maximum(y, 0.0)
    pooled = jnp.mean(y, axis=(2, 3))                   # [N, Cout]
    return pooled @ params["w_fc"] + params["b_fc"]


def init_params(key, in_chans=3, hidden=32, num_classes=10):
    ks = jax.random.split(key, 6)
    fan_conv = in_chans * 9
    return {
        "w_conv": jax.random.normal(ks[0], (hidden, in_chans, 3, 3), jnp.float32)
                  * (1.0 / np.sqrt(fan_conv)),
        "b_conv": jax.random.normal(ks[1], (hidden,), jnp.float32) * 0.01,
        "bn_gamma": 1.0 + 0.1 * jax.random.normal(ks[2], (hidden,), jnp.float32),
        "bn_beta": 0.1 * jax.random.normal(ks[3], (hidden,), jnp.float32),
        "bn_mean": jnp.zeros((hidden,), jnp.float32),
        "bn_var": jnp.ones((hidden,), jnp.float32),
        "w_fc": jax.random.normal(ks[4], (hidden, num_classes), jnp.float32)
                * (1.0 / np.sqrt(hidden)),
        "b_fc": jax.random.normal(ks[5], (num_classes,), jnp.float32) * 0.01,
    }


if __name__ == "__main__":
    key = jax.random.PRNGKey(0)
    k_x, k_p = jax.random.split(key)

    # Small shapes consistent with an image classifier: batch=2, in_chans=3, 16x16.
    x = jax.random.normal(k_x, (2, 3, 16, 16), jnp.float32)
    params = init_params(k_p, in_chans=3, hidden=32, num_classes=10)

    out = jax.jit(timm_forward)(x, params)
    out = jax.block_until_ready(out)

    ref = _reference_forward(x, params)
    assert out.shape == (2, 10)
    np.testing.assert_allclose(np.asarray(out), np.asarray(ref),
                               rtol=1e-4, atol=1e-4)

    print("KERNEL_OK")
</pallas_src>

<mosaic_0001>
module attributes {stable_mosaic.version = 11 : i64} {
  func.func @fused_conv_gap_head_kernel(%arg0: i32, %arg1: i32, %arg2: memref<1x1x10x18x8xf32, #tpu.memory_space<vmem>>, %arg3: memref<9x8x128xf32, #tpu.memory_space<vmem>>, %arg4: memref<1x128xf32, #tpu.memory_space<vmem>>, %arg5: memref<128x128xf32, #tpu.memory_space<vmem>>, %arg6: memref<1x128xf32, #tpu.memory_space<vmem>>, %arg7: memref<1x1x128xf32, #tpu.memory_space<vmem>>, %arg8: memref<1x128xf32, #tpu.memory_space<vmem>>) attributes {dimension_semantics = [#tpu.dimension_semantics<parallel>, #tpu.dimension_semantics<arbitrary>], iteration_bounds = array<i64: 2, 2>, scalar_prefetch = 0 : i64, scratch_operands = 1 : i64, tpu.core_type = #tpu.core_type<tc>, window_params = [{transform_indices = @transform_0, window_bounds = array<i64: 1, 1, 10, 18, 8>}, {pipeline_mode = #tpu.pipeline_mode<synchronous>, transform_indices = @transform_1, window_bounds = array<i64: 9, 8, 128>}, {pipeline_mode = #tpu.pipeline_mode<synchronous>, transform_indices = @transform_2, window_bounds = array<i64: 1, 128>}, {pipeline_mode = #tpu.pipeline_mode<synchronous>, transform_indices = @transform_3, window_bounds = array<i64: 128, 128>}, {pipeline_mode = #tpu.pipeline_mode<synchronous>, transform_indices = @transform_4, window_bounds = array<i64: 1, 128>}, {transform_indices = @transform_5, window_bounds = array<i64: 1, 1, 128>}]} {
    %c0_i32 = arith.constant 0 : i32
    %0 = arith.cmpi eq, %arg1, %c0_i32 : i32
    %1 = arith.extui %0 : i1 to i32
    %c0_i32_0 = arith.constant 0 : i32
    %2 = arith.cmpi ne, %1, %c0_i32_0 : i32
    scf.if %2 {
      %cst_81 = arith.constant 0.000000e+00 : f32
      %78 = vector.broadcast %cst_81 : f32 to vector<1x128xf32>
      %c0_82 = arith.constant 0 : index
      %c0_83 = arith.constant 0 : index
      %79 = vector.load %arg8[%c0_82, %c0_83] : memref<1x128xf32, #tpu.memory_space<vmem>>, vector<1x128xf32>
      tpu.vector_store %arg8[%c0_82, %c0_83], %78 {strides = array<i32>} : memref<1x128xf32, #tpu.memory_space<vmem>>, vector<1x128xf32>,
    } else {
    }
    %c0 = arith.constant 0 : index
    %c0_1 = arith.constant 0 : index
    %c0_2 = arith.constant 0 : index
    %c0_3 = arith.constant 0 : index
    %c0_4 = arith.constant 0 : index
    %3 = vector.load %arg2[%c0, %c0_1, %c0_2, %c0_3, %c0_4] : memref<1x1x10x18x8xf32, #tpu.memory_space<vmem>>, vector<1x1x8x16x8xf32>
    %4 = vector.shape_cast %3 : vector<1x1x8x16x8xf32> to vector<8x16x8xf32>
    %5 = vector.shape_cast %4 : vector<8x16x8xf32> to vector<128x8xf32>
    %c0_5 = arith.constant 0 : index
    %c0_6 = arith.constant 0 : index
    %c0_7 = arith.constant 0 : index
    %6 = vector.load %arg3[%c0_5, %c0_6, %c0_7] : memref<9x8x128xf32, #tpu.memory_space<vmem>>, vector<1x8x128xf32>
    %7 = vector.shape_cast %6 : vector<1x8x128xf32> to vector<8x128xf32>
    %cst = arith.constant dense<0.000000e+00> : vector<128x128xf32>
    %8 = tpu.matmul %5, %7, %cst {dimension_numbers = #tpu.dot_dimension_numbers<[1], [0], [0], [1], [0, 0, 1, 1], [], []>} : vector<128x8xf32>, vector<8x128xf32>, vector<128x128xf32> -> vector<128x128xf32>
    %c0_8 = arith.constant 0 : index
    %c0_9 = arith.constant 0 : index
    %c0_10 = arith.constant 0 : index
    %c1 = arith.constant 1 : index
    %c0_11 = arith.constant 0 : index
    %9 = vector.load %arg2[%c0_8, %c0_9, %c0_10, %c1, %c0_11] : memref<1x1x10x18x8xf32, #tpu.memory_space<vmem>>, vector<1x1x8x16x8xf32>
    %10 = vector.shape_cast %9 : vector<1x1x8x16x8xf32> to vector<8x16x8xf32>
    %11 = vector.shape_cast %10 : vector<8x16x8xf32> to vector<128x8xf32>
    %c1_12 = arith.constant 1 : index
    %c0_13 = arith.constant 0 : index
    %c0_14 = arith.constant 0 : index
    %12 = vector.load %arg3[%c1_12, %c0_13, %c0_14] : memref<9x8x128xf32, #tpu.memory_space<vmem>>, vector<1x8x128xf32>
    %13 = vector.shape_cast %12 : vector<1x8x128xf32> to vector<8x128xf32>
    %cst_15 = arith.constant dense<0.000000e+00> : vector<128x128xf32>
    %14 = tpu.matmul %11, %13, %cst_15 {dimension_numbers = #tpu.dot_dimension_numbers<[1], [0], [0], [1], [0, 0, 1, 1], [], []>} : vector<128x8xf32>, vector<8x128xf32>, vector<128x128xf32> -> vector<128x128xf32>
    %15 = arith.addf %8, %14 : vector<128x128xf32>
    %c0_16 = arith.constant 0 : index
    %c0_17 = arith.constant 0 : index
    %c0_18 = arith.constant 0 : index
    %c2 = arith.constant 2 : index
    %c0_19 = arith.constant 0 : index
    %16 = vector.load %arg2[%c0_16, %c0_17, %c0_18, %c2, %c0_19] : memref<1x1x10x18x8xf32, #tpu.memory_space<vmem>>, vector<1x1x8x16x8xf32>
    %17 = vector.shape_cast %16 : vector<1x1x8x16x8xf32> to vector<8x16x8xf32>
    %18 = vector.shape_cast %17 : vector<8x16x8xf32> to vector<128x8xf32>
    %c2_20 = arith.constant 2 : index
    %c0_21 = arith.constant 0 : index
    %c0_22 = arith.constant 0 : index
    %19 = vector.load %arg3[%c2_20, %c0_21, %c0_22] : memref<9x8x128xf32, #tpu.memory_space<vmem>>, vector<1x8x128xf32>
    %20 = vector.shape_cast %19 : vector<1x8x128xf32> to vector<8x128xf32>
    %cst_23 = arith.constant dense<0.000000e+00> : vector<128x128xf32>
    %21 = tpu.matmul %18, %20, %cst_23 {dimension_numbers = #tpu.dot_dimension_numbers<[1], [0], [0], [1], [0, 0, 1, 1], [], []>} : vector<128x8xf32>, vector<8x128xf32>, vector<128x128xf32> -> vector<128x128xf32>
    %22 = arith.addf %15, %21 : vector<128x128xf32>
    %c0_24 = arith.constant 0 : index
    %c0_25 = arith.constant 0 : index
    %c1_26 = arith.constant 1 : index
    %c0_27 = arith.constant 0 : index
    %c0_28 = arith.constant 0 : index
    %23 = vector.load %arg2[%c0_24, %c0_25, %c1_26, %c0_27, %c0_28] : memref<1x1x10x18x8xf32, #tpu.memory_space<vmem>>, vector<1x1x8x16x8xf32>
    %24 = vector.shape_cast %23 : vector<1x1x8x16x8xf32> to vector<8x16x8xf32>
    %25 = vector.shape_cast %24 : vector<8x16x8xf32> to vector<128x8xf32>
    %c3 = arith.constant 3 : index
    %c0_29 = arith.constant 0 : index
    %c0_30 = arith.constant 0 : index
    %26 = vector.load %arg3[%c3, %c0_29, %c0_30] : memref<9x8x128xf32, #tpu.memory_space<vmem>>, vector<1x8x128xf32>
    %27 = vector.shape_cast %26 : vector<1x8x128xf32> to vector<8x128xf32>
    %cst_31 = arith.constant dense<0.000000e+00> : vector<128x128xf32>
    %28 = tpu.matmul %25, %27, %cst_31 {dimension_numbers = #tpu.dot_dimension_numbers<[1], [0], [0], [1], [0, 0, 1, 1], [], []>} : vector<128x8xf32>, vector<8x128xf32>, vector<128x128xf32> -> vector<128x128xf32>
    %29 = arith.addf %22, %28 : vector<128x128xf32>
    %c0_32 = arith.constant 0 : index
    %c0_33 = arith.constant 0 : index
    %c1_34 = arith.constant 1 : index
    %c1_35 = arith.constant 1 : index
    %c0_36 = arith.constant 0 : index
    %30 = vector.load %arg2[%c0_32, %c0_33, %c1_34, %c1_35, %c0_36] : memref<1x1x10x18x8xf32, #tpu.memory_space<vmem>>, vector<1x1x8x16x8xf32>
    %31 = vector.shape_cast %30 : vector<1x1x8x16x8xf32> to vector<8x16x8xf32>
    %32 = vector.shape_cast %31 : vector<8x16x8xf32> to vector<128x8xf32>
    %c4 = arith.constant 4 : index
    %c0_37 = arith.constant 0 : index
    %c0_38 = arith.constant 0 : index
    %33 = vector.load %arg3[%c4, %c0_37, %c0_38] : memref<9x8x128xf32, #tpu.memory_space<vmem>>, vector<1x8x128xf32>
    %34 = vector.shape_cast %33 : vector<1x8x128xf32> to vector<8x128xf32>
    %cst_39 = arith.constant dense<0.000000e+00> : vector<128x128xf32>
    %35 = tpu.matmul %32, %34, %cst_39 {dimension_numbers = #tpu.dot_dimension_numbers<[1], [0], [0], [1], [0, 0, 1, 1], [], []>} : vector<128x8xf32>, vector<8x128xf32>, vector<128x128xf32> -> vector<128x128xf32>
    %36 = arith.addf %29, %35 : vector<128x128xf32>
    %c0_40 = arith.constant 0 : index
    %c0_41 = arith.constant 0 : index
    %c1_42 = arith.constant 1 : index
    %c2_43 = arith.constant 2 : index
    %c0_44 = arith.constant 0 : index
    %37 = vector.load %arg2[%c0_40, %c0_41, %c1_42, %c2_43, %c0_44] : memref<1x1x10x18x8xf32, #tpu.memory_space<vmem>>, vector<1x1x8x16x8xf32>
    %38 = vector.shape_cast %37 : vector<1x1x8x16x8xf32> to vector<8x16x8xf32>
    %39 = vector.shape_cast %38 : vector<8x16x8xf32> to vector<128x8xf32>
    %c5 = arith.constant 5 : index
    %c0_45 = arith.constant 0 : index
    %c0_46 = arith.constant 0 : index
    %40 = vector.load %arg3[%c5, %c0_45, %c0_46] : memref<9x8x128xf32, #tpu.memory_space<vmem>>, vector<1x8x128xf32>
    %41 = vector.shape_cast %40 : vector<1x8x128xf32> to vector<8x128xf32>
    %cst_47 = arith.constant dense<0.000000e+00> : vector<128x128xf32>
    %42 = tpu.matmul %39, %41, %cst_47 {dimension_numbers = #tpu.dot_dimension_numbers<[1], [0], [0], [1], [0, 0, 1, 1], [], []>} : vector<128x8xf32>, vector<8x128xf32>, vector<128x128xf32> -> vector<128x128xf32>
    %43 = arith.addf %36, %42 : vector<128x128xf32>
    %c0_48 = arith.constant 0 : index
    %c0_49 = arith.constant 0 : index
    %c2_50 = arith.constant 2 : index
    %c0_51 = arith.constant 0 : index
    %c0_52 = arith.constant 0 : index
    %44 = vector.load %arg2[%c0_48, %c0_49, %c2_50, %c0_51, %c0_52] : memref<1x1x10x18x8xf32, #tpu.memory_space<vmem>>, vector<1x1x8x16x8xf32>
    %45 = vector.shape_cast %44 : vector<1x1x8x16x8xf32> to vector<8x16x8xf32>
    %46 = vector.shape_cast %45 : vector<8x16x8xf32> to vector<128x8xf32>
    %c6 = arith.constant 6 : index
    %c0_53 = arith.constant 0 : index
    %c0_54 = arith.constant 0 : index
    %47 = vector.load %arg3[%c6, %c0_53, %c0_54] : memref<9x8x128xf32, #tpu.memory_space<vmem>>, vector<1x8x128xf32>
    %48 = vector.shape_cast %47 : vector<1x8x128xf32> to vector<8x128xf32>
    %cst_55 = arith.constant dense<0.000000e+00> : vector<128x128xf32>
    %49 = tpu.matmul %46, %48, %cst_55 {dimension_numbers = #tpu.dot_dimension_numbers<[1], [0], [0], [1], [0, 0, 1, 1], [], []>} : vector<128x8xf32>, vector<8x128xf32>, vector<128x128xf32> -> vector<128x128xf32>
    %50 = arith.addf %43, %49 : vector<128x128xf32>
    %c0_56 = arith.constant 0 : index
    %c0_57 = arith.constant 0 : index
    %c2_58 = arith.constant 2 : index
    %c1_59 = arith.constant 1 : index
    %c0_60 = arith.constant 0 : index
    %51 = vector.load %arg2[%c0_56, %c0_57, %c2_58, %c1_59, %c0_60] : memref<1x1x10x18x8xf32, #tpu.memory_space<vmem>>, vector<1x1x8x16x8xf32>
    %52 = vector.shape_cast %51 : vector<1x1x8x16x8xf32> to vector<8x16x8xf32>
    %53 = vector.shape_cast %52 : vector<8x16x8xf32> to vector<128x8xf32>
    %c7 = arith.constant 7 : index
    %c0_61 = arith.constant 0 : index
    %c0_62 = arith.constant 0 : index
    %54 = vector.load %arg3[%c7, %c0_61, %c0_62] : memref<9x8x128xf32, #tpu.memory_space<vmem>>, vector<1x8x128xf32>
    %55 = vector.shape_cast %54 : vector<1x8x128xf32> to vector<8x128xf32>
    %cst_63 = arith.constant dense<0.000000e+00> : vector<128x128xf32>
    %56 = tpu.matmul %53, %55, %cst_63 {dimension_numbers = #tpu.dot_dimension_numbers<[1], [0], [0], [1], [0, 0, 1, 1], [], []>} : vector<128x8xf32>, vector<8x128xf32>, vector<128x128xf32> -> vector<128x128xf32>
    %57 = arith.addf %50, %56 : vector<128x128xf32>
    %c0_64 = arith.constant 0 : index
    %c0_65 = arith.constant 0 : index
    %c2_66 = arith.constant 2 : index
    %c2_67 = arith.constant 2 : index
    %c0_68 = arith.constant 0 : index
    %58 = vector.load %arg2[%c0_64, %c0_65, %c2_66, %c2_67, %c0_68] : memref<1x1x10x18x8xf32, #tpu.memory_space<vmem>>, vector<1x1x8x16x8xf32>
    %59 = vector.shape_cast %58 : vector<1x1x8x16x8xf32> to vector<8x16x8xf32>
    %60 = vector.shape_cast %59 : vector<8x16x8xf32> to vector<128x8xf32>
    %c8 = arith.constant 8 : index
    %c0_69 = arith.constant 0 : index
    %c0_70 = arith.constant 0 : index
    %61 = vector.load %arg3[%c8, %c0_69, %c0_70] : memref<9x8x128xf32, #tpu.memory_space<vmem>>, vector<1x8x128xf32>
    %62 = vector.shape_cast %61 : vector<1x8x128xf32> to vector<8x128xf32>
    %cst_71 = arith.constant dense<0.000000e+00> : vector<128x128xf32>
    %63 = tpu.matmul %60, %62, %cst_71 {dimension_numbers = #tpu.dot_dimension_numbers<[1], [0], [0], [1], [0, 0, 1, 1], [], []>} : vector<128x8xf32>, vector<8x128xf32>, vector<128x128xf32> -> vector<128x128xf32>
    %64 = arith.addf %57, %63 : vector<128x128xf32>
    %c0_72 = arith.constant 0 : index
    %c0_73 = arith.constant 0 : index
    %65 = vector.load %arg4[%c0_72, %c0_73] : memref<1x128xf32, #tpu.memory_space<vmem>>, vector<1x128xf32>
    %66 = vector.broadcast %65 : vector<1x128xf32> to vector<128x128xf32>
    %67 = arith.addf %64, %66 : vector<128x128xf32>
    %cst_74 = arith.constant 0.000000e+00 : f32
    %68 = vector.broadcast %cst_74 : f32 to vector<128x128xf32>
    %69 = arith.maximumf %67, %68 : vector<128x128xf32>
    %c0_75 = arith.constant 0 : index
    %c0_76 = arith.constant 0 : index
    %70 = vector.load %arg8[%c0_75, %c0_76] : memref<1x128xf32, #tpu.memory_space<vmem>>, vector<1x128xf32>
    %cst_77 = arith.constant dense<0.000000e+00> : vector<128xf32>
    %71 = vector.multi_reduction <add>, %69, %cst_77 [0] : vector<128x128xf32> to vector<128xf32>
    %72 = vector.shape_cast %71 : vector<128xf32> to vector<1x128xf32>
    %73 = arith.addf %70, %72 : vector<1x128xf32>
    %c0_78 = arith.constant 0 : index
    %c0_79 = arith.constant 0 : index
    %74 = vector.load %arg8[%c0_78, %c0_79] : memref<1x128xf32, #tpu.memory_space<vmem>>, vector<1x128xf32>
    tpu.vector_store %arg8[%c0_78, %c0_79], %73 {strides = array<i32>} : memref<1x128xf32, #tpu.memory_space<vmem>>, vector<1x128xf32>,
    %c1_i32 = arith.constant 1 : i32
    %75 = arith.cmpi eq, %arg1, %c1_i32 : i32
    %76 = arith.extui %75 : i1 to i32
    %c0_i32_80 = arith.constant 0 : i32
    %77 = arith.cmpi ne, %76, %c0_i32_80 : i32
    scf.if %77 {
      %c0_81 = arith.constant 0 : index
      %c0_82 = arith.constant 0 : index
      %78 = vector.load %arg8[%c0_81, %c0_82] : memref<1x128xf32, #tpu.memory_space<vmem>>, vector<1x128xf32>
      %cst_83 = arith.constant 3.906250e-03 : f32
      %79 = vector.broadcast %cst_83 : f32 to vector<1x128xf32>
      %80 = arith.mulf %78, %79 : vector<1x128xf32>
      %c0_84 = arith.constant 0 : index
      %c0_85 = arith.constant 0 : index
      %81 = vector.load %arg5[%c0_84, %c0_85] : memref<128x128xf32, #tpu.memory_space<vmem>>, vector<128x128xf32>
      %cst_86 = arith.constant dense<0.000000e+00> : vector<1x128xf32>
      %82 = tpu.matmul %80, %81, %cst_86 {dimension_numbers = #tpu.dot_dimension_numbers<[1], [0], [0], [1], [0, 0, 1, 1], [], []>} : vector<1x128xf32>, vector<128x128xf32>, vector<1x128xf32> -> vector<1x128xf32>
      %c0_87 = arith.constant 0 : index
      %c0_88 = arith.constant 0 : index
      %83 = vector.load %arg6[%c0_87, %c0_88] : memref<1x128xf32, #tpu.memory_space<vmem>>, vector<1x128xf32>
      %84 = arith.addf %82, %83 : vector<1x128xf32>
      %c0_89 = arith.constant 0 : index
      %c0_90 = arith.constant 0 : index
      %c0_91 = arith.constant 0 : index
      %85 = vector.load %arg7[%c0_89, %c0_90, %c0_91] : memref<1x1x128xf32, #tpu.memory_space<vmem>>, vector<1x1x128xf32>
      %86 = vector.shape_cast %85 : vector<1x1x128xf32> to vector<1x128xf32>
      %87 = vector.shape_cast %84 : vector<1x128xf32> to vector<1x1x128xf32>
      tpu.vector_store %arg7[%c0_89, %c0_90, %c0_91], %87 {strides = array<i32>} : memref<1x1x128xf32, #tpu.memory_space<vmem>>, vector<1x1x128xf32>,
    } else {
    }
    return
  }
  func.func @transform_0(%arg0: i32, %arg1: i32) -> (i32, i32, i32, i32, i32) {
    %c0_i32 = arith.constant 0 : i32
    %c0_i32_0 = arith.constant 0 : i32
    %c0_i32_1 = arith.constant 0 : i32
    %c0_i32_2 = arith.constant 0 : i32
    return %arg0, %arg1, %c0_i32, %c0_i32_0, %c0_i32_1 : i32, i32, i32, i32, i32
  }
  func.func @transform_1(%arg0: i32, %arg1: i32) -> (i32, i32, i32) {
    %c0_i32 = arith.constant 0 : i32
    %c0_i32_0 = arith.constant 0 : i32
    %c0_i32_1 = arith.constant 0 : i32
    %c0_i32_2 = arith.constant 0 : i32
    return %c0_i32, %c0_i32_0, %c0_i32_1 : i32, i32, i32
  }
  func.func @transform_2(%arg0: i32, %arg1: i32) -> (i32, i32) {
    %c0_i32 = arith.constant 0 : i32
    %c0_i32_0 = arith.constant 0 : i32
    %c0_i32_1 = arith.constant 0 : i32
    return %c0_i32, %c0_i32_0 : i32, i32
  }
  func.func @transform_3(%arg0: i32, %arg1: i32) -> (i32, i32) {
    %c0_i32 = arith.constant 0 : i32
    %c0_i32_0 = arith.constant 0 : i32
    %c0_i32_1 = arith.constant 0 : i32
    return %c0_i32, %c0_i32_0 : i32, i32
  }
  func.func @transform_4(%arg0: i32, %arg1: i32) -> (i32, i32) {
    %c0_i32 = arith.constant 0 : i32
    %c0_i32_0 = arith.constant 0 : i32
    %c0_i32_1 = arith.constant 0 : i32
    return %c0_i32, %c0_i32_0 : i32, i32
  }
  func.func @transform_5(%arg0: i32, %arg1: i32) -> (i32, i32, i32) {
    %c0_i32 = arith.constant 0 : i32
    %c0_i32_0 = arith.constant 0 : i32
    %c0_i32_1 = arith.constant 0 : i32
    return %arg0, %c0_i32, %c0_i32_0 : i32, i32, i32
  }
}

</mosaic_0001>

<bundles_post_ra>
// kernel: timm_forward.1
= control target key start
LH: loop header
LB: loop body
LE: loop exit
PB: predicated region body
PF: predicated region fallthrough
CT: control target
= control target key end

     0   :  { %10 = vsyncpa [#allocation4], 0  ;;  %s4233_s0 = inlined_call_operand.vmem [shape: f32[2,2,10,18,8], index: 0, kind: input, shape index: {}]   ;;  %s4234_s1 = inlined_call_operand.vmem [shape: f32[9,8,128], index: 1, kind: input, shape index: {}]   ;;  %s4235_s2 = inlined_call_operand.vmem [shape: f32[1,128], index: 2, kind: input, shape index: {}]   ;;  %s4236_s3 = inlined_call_operand.vmem [shape: f32[128,128], index: 3, kind: input, shape index: {}]   ;;  %s4237_s4 = inlined_call_operand.vmem [shape: f32[1,128], index: 4, kind: input, shape index: {}]   ;;  %s4238_s5 = inlined_call_operand.hbm [shape: f32[2,1,128], index: 5, kind: output, shape index: {}]  }
   0x1   :  { %12 = vsyncpa [#allocation4 + $0x1], 0  ;;  %s3572_s18 = smov 0   ;;  %s3574_s19 = smov 0  }
   0x2   :  { %s3576_s20 = smov 0   ;;  %s3578_s21 = smov 0  }
   0x3   :  { %s3580_s22 = smov 0   ;;  %s3582_s23 = smov 0  }
   0x4   :  { %s3584_s24 = smov 0   ;;  %s3586_s25 = smov 0  }
   0x5 LB: > { %s2511_s26 = sadd.s32 4294967295, %s3535_s25   ;;  %s2512_s27 = sadd.s32 4294967294, %s3535_s25   ;;  %s3535_s25 = sphi %s3586_s25, %s18_s25   ;;  %s3531_s24 = sphi %s3584_s24, %s4250_s24   ;;  %s3527_s23 = sphi %s3582_s23, %s4249_s23   ;;  %s3523_s22 = sphi %s3580_s22, %s4248_s22   ;;  %s3519_s21 = sphi %s3578_s21, %s4247_s21   ;;  %s3515_s20 = sphi %s3576_s20, %s4246_s20   ;;  %s3511_s19 = sphi %s3574_s19, %s4245_s19   ;;  %s3507_s18 = sphi %s3572_s18, %s4244_s18  }
   0x6   : > { %s27_s28 = sadd.s32 1, %s3527_s23  ;;  %s30_s29 = sadd.s32 1, %s3531_s24 }
   0x7   : > { %p28_p0 = scmp.ge.s32.totalorder %s27_s28, 2  ;;  %p159_p1 = scmp.ne.s32.totalorder %s3515_s20, %s3511_s19 }
   0x8   : > { %p160_p2 = scmp.eq.s32.totalorder %s2511_s26, 3  ;;  %p165_p4 = scmp.ne.s32.totalorder %s3511_s19, %s3507_s18 }
   0x9   : > { %s4252_s28 = smov (%p28_p0, %s27_s28), 0  ;;  %s4254_s29 = smov (!%p28_p0, %s30_s29), %s3531_s24 }
   0xa   : > { %p3621_p3 = por %p160_p2, %p159_p1  ;;  %p32_p5 = scmp.ge.s32.totalorder %s4254_s29, 2 }
   0xb   : > { %p166_p6 = scmp.eq.s32.totalorder %s2512_s27, 3  ;;  %p2515_p7 = scmp.ge.s32.totalorder %s3535_s25, 1 }
   0xc   : > { %p208_p8 = scmp.lt.s32.totalorder %s3535_s25, 5  ;;  %s4256_s29 = smov (%p32_p5, %s4254_s29), 0 }
   0xd   : > { %4241 = sst [smem:[#allocation6_spill]] %s4256_s29  ;;  %p3631_p9 = por %p166_p6, %p165_p4 }
   0xe   : > { %p209_p10 = pnand %p2515_p7, %p208_p8  ;;  %s146_s7 = ssub.s32 %s3531_s24, %s4256_s29 }
   0xf   : > { %s149_s8 = sadd.s32 1, %s3515_s20  ;;  %p147_p11 = scmp.eq.s32.totalorder %s146_s7, 0 }
  0x10   : > { %212 = sbr.rel (%p209_p10) target bundleno = 667 (0x29b), region = 40  ;;  %s237_s10 = sand.u32 (!%p209_p10), 1, %s3511_s19  }
  0x11   : > { %s3639_s9 = scalar_select %p147_p11, %s3515_s20, %s149_s8  }
  0x12   : > { %p239_p12 = scmp.lt.s32.totalorder (!%p209_p10), %s3523_s22, 1  ;;  %p241_p13 = scmp.lt.s32.totalorder (!%p209_p10), %s3519_s21, 1 }
  0x13   : > { %s3653_s7 = scalar_lea.vmem (!%p209_p10), [#allocation3], %s237_s10  ;;  %p2517_p0 = scmp.ne.s32.totalorder (!%p209_p10), %s3519_s21, 0 }
  0x17   : > { %s240_s11 = scalar_select %p239_p12, %s3523_s22, 1 }
  0x18   : > { %s242_s12 = scalar_select %p241_p13, %s3519_s21, 1 }
  0x19   : > { %s3365_s13 = smul.u32 60, %s240_s11  ;;  %v3537_v0 = vmov (!%p2517_p0), 0.0  }
  0x1a   : > { %s3364_s14 = smul.u32 30, %s242_s12  ;;  %252 = vst [vmem:[#allocation2] sm:$0x1] (!%p2517_p0), %v3537_v0 }
  0x1b   : > { %251 = sbr.rel (%p2517_p0) target bundleno = 34 (0x22), region = 44 }
  0x1c   : > { %s245_s15 = sadd.s32 %s3365_s13, %s3364_s14 }
  0x1d   : > { %s2516_s16 = sshll.u32 %s245_s15, 3 }
  0x1e   : > { %s3649_s27 = scalar_lea.vmem %s4233_s0, %s2516_s16 }
  0x22 PF: > { %v2518_v1 = vld [vmem:[%s4234_s1 + $0x8] sm:$0xff]  ;;  %v3662_v2 = vld [vmem:[%s4234_s1 + $0x20] sm:$0xff]  ;;  %vm288_vm0 = vcmask 64512   ;;  %v3680_v9 = vld [vmem:[%s3649_s27 + $0x31] sm:$0xff]  ;;  %p2767_p1 = scmp.ne.s32.totalorder %s3519_s21, 1 }
  0x23   : > { %v270_v3 = vld [vmem:[%s3649_s27 + $0x1] sm:$0xff]  ;;  %2941 = vmatprep.subr.mxu1 %v2518_v1  ;;  %3045 = vmatprep.subr.mxu0 %v3662_v2  ;;  %v2601_v4 = vld [vmem:[%s3649_s27 + $0x19] sm:$0xff]  ;;  %v271_v5 = vld [vmem:[%s3649_s27 + $0x9] sm:$0xff]  ;;  %vm3539_vm1 = vmmov (!%p2767_p1), 0  }
  0x24   : > { %v269_v6 = vld [vmem:[%s4234_s1] sm:$0xff]  ;;  %2942 = vmatpush3.msra.mxu1 %v2518_v1  ;;  %2943 = vmatprep.mubr.msk.f32.mxu1 %vm288_vm0, %v270_v3  ;;  %v2650_v8 = vld [vmem:[%s4234_s1 + $0x28] sm:$0xff]  ;;  %v2683_v10 = vld [vmem:[%s4234_s1 + $0x30] sm:$0xff] }
  0x25   : > { %v2602_v7 = vld [vmem:[%s3649_s27 + $0x21] sm:$0xff]  ;;  %3046 = vmatpush3.msra.mxu0 %v3662_v2  ;;  %3047 = vmatprep.mubr.msk.f32.mxu0 %vm288_vm0, %v2601_v4  ;;  %v3687_v11 = vld [vmem:[%s3649_s27 + $0x39] sm:$0xff]  ;;  %v3693_v12 = vld [vmem:[%s3649_s27 + $0x49] sm:$0xff] }
  0x26   : > { %2944 = vmatmul.mubr.msk.f32.vlgmr.msra.gmra.mrb[0].mxu1 %vm288_vm0, %v271_v5  ;;  %2967 = vmatprep.subr.mxu1 %v269_v6  ;;  %v3703_v13 = vld [vmem:[%s3649_s27 + $0x51] sm:$0xff]  ;;  %v3709_v15 = vld [vmem:[%s3649_s27 + $0x61] sm:$0xff]  ;;  %v3720_v16 = vld [vmem:[%s3649_s27 + $0x69] sm:$0xff] }
  0x27   : > { %3048 = vmatmul.mubr.msk.f32.vlgmr.msra.gmra.mrb[0].mxu0 %vm288_vm0, %v2602_v7  ;;  %3071 = vmatprep.subr.mxu0 %v2650_v8  ;;  %v2551_v14 = vld [vmem:[%s4234_s1 + $0x10] sm:$0xff]  ;;  %v3723_v17 = vld [vmem:[%s3649_s27 + $0x1a] sm:$0xff]  ;;  %v3734_v18 = vld [vmem:[%s3649_s27 + $0x22] sm:$0xff] }
  0x28   : > { %2968 = vmatpush3.msra.mxu1 %v269_v6  ;;  %3072 = vmatpush3.msra.mxu0 %v2650_v8  ;;  %v3737_v19 = vld [vmem:[%s3649_s27 + $0x79] sm:$0xff]  ;;  %v3754_v22 = vld [vmem:[%s3649_s27 + $0x81] sm:$0xff]  ;;  %v3762_v24 = vld [vmem:[%s3649_s27 + $0x91] sm:$0xff] }
  0x29   : > { %2946 = vmatprep.mubr.msk.f32.mxu1 %vm288_vm0, %v2601_v4  ;;  %3050 = vmatprep.mubr.msk.f32.mxu0 %vm288_vm0, %v3680_v9  ;;  %v3740_v20 = vld [vmem:[%s3649_s27 + $0x32] sm:$0xff]  ;;  %v3759_v23 = vld [vmem:[%s3649_s27 + $0x3a] sm:$0xff]  ;;  %v3765_v25 = vld [vmem:[%s3649_s27 + $0x4a] sm:$0xff] }
  0x2a   : > { %2947 = vmatmul.mubr.msk.f32.gmra.mrb[2].mxu1 %vm288_vm0, %v2602_v7  ;;  %3097 = vmatprep.subr.mxu0 %v2683_v10  ;;  %v3747_v21 = vld [vmem:[%s4234_s1 + $0x38] sm:$0xff]  ;;  %v3783_v28 = vld [vmem:[%s3649_s27 + $0xa9] sm:$0xff]  ;;  %v253_v32 = vld [vmem:[%s3649_s27] sm:$0xff] }
  0x2b   : > { %3051 = vmatmul.mubr.msk.f32.gmra.mrb[2].mxu0 %vm288_vm0, %v3687_v11  ;;  %2949 = vmatprep.mubr.msk.f32.mxu1 %vm288_vm0, %v3680_v9  ;;  %v3775_v26 = vld [vmem:[%s3649_s27 + $0x99] sm:$0xff]  ;;  %v3786_v29 = vld [vmem:[%s3649_s27 + $0x62] sm:$0xff]  ;;  %v3795_v30 = vld [vmem:[%s3649_s27 + $0xb1] sm:$0xff] }
  0x2c   : > { %3053 = vmatprep.mubr.msk.f32.mxu0 %vm288_vm0, %v3693_v12  ;;  %2993 = vmatprep.subr.mxu1 %v2551_v14  ;;  %v3780_v27 = vld [vmem:[%s3649_s27 + $0x52] sm:$0xff]  ;;  %v3800_v31 = vld [vmem:[%s3649_s27 + $0x6a] sm:$0xff]  ;;  %v3804_v33 = vld [vmem:[%s3649_s27 + $0x7a] sm:$0xff] }
  0x2d   : > { %v254_v34 = vld [vmem:[%s3649_s27 + $0x8] sm:$0xff]  ;;  %v3818_v36 = vld [vmem:[%s3649_s27 + $0x18] sm:$0xff]  ;;  %v3830_v39 = vld [vmem:[%s3649_s27 + $0x20] sm:$0xff] }
  0x2e   : > { %2950 = vmatmul.mubr.msk.f32.gmra.mrb[4].mxu1 %vm288_vm0, %v3687_v11  ;;  %v3815_v35 = vld [vmem:[%s3649_s27 + $0x82] sm:$0xff]  ;;  %v3821_v37 = vld [vmem:[%s3649_s27 + $0x92] sm:$0xff]  ;;  %v3837_v40 = vld [vmem:[%s3649_s27 + $0x9a] sm:$0xff] }
  0x2f   : > { %3054 = vmatmul.mubr.msk.f32.gmra.mrb[4].mxu0 %vm288_vm0, %v3703_v13  ;;  %2952 = vmatprep.mubr.msk.f32.mxu1 %vm288_vm0, %v3693_v12  ;;  %v2584_v38 = vld [vmem:[%s4234_s1 + $0x18] sm:$0xff]  ;;  %v3840_v41 = vld [vmem:[%s3649_s27 + $0x30] sm:$0xff]  ;;  %v3860_v45 = vld [vmem:[%s3649_s27 + $0x48] sm:$0xff] }
  0x30   : > { %3056 = vmatprep.mubr.msk.f32.mxu0 %vm288_vm0, %v3709_v15  ;;  %v3843_v42 = vld [vmem:[%s3649_s27 + $0xaa] sm:$0xff]  ;;  %v3852_v43 = vld [vmem:[%s3649_s27 + $0x38] sm:$0xff]  ;;  %v3863_v46 = vld [vmem:[%s3649_s27 + $0xc2] sm:$0xff] }
  0x31   : > { %v3857_v44 = vld [vmem:[%s3649_s27 + $0xb2] sm:$0xff]  ;;  %v3877_v48 = vld [vmem:[%s3649_s27 + $0xca] sm:$0xff]  ;;  %v3880_v49 = vld [vmem:[%s3649_s27 + $0x60] sm:$0xff] }
  0x32   : > { %2953 = vmatmul.mubr.msk.f32.gmra.mrb[6].mxu1 %vm288_vm0, %v3703_v13  ;;  %v3872_v47 = vld [vmem:[%s3649_s27 + $0x50] sm:$0xff]  ;;  %v3889_v50 = vld [vmem:[%s3649_s27 + $0x68] sm:$0xff]  ;;  %v3894_v51 = vld [vmem:[%s3649_s27 + $0x78] sm:$0xff] }
  0x33   : > { %3057 = vmatmul.mubr.msk.f32.gmra.mrb[6].mxu0 %vm288_vm0, %v3720_v16  ;;  %2955 = vmatprep.mubr.msk.f32.mxu1 %vm288_vm0, %v3709_v15  ;;  %v2749_v52 = vld [vmem:[%s4234_s1 + $0x40] sm:$0xff]  ;;  %v3912_v54 = vld [vmem:[%s3649_s27 + $0x90] sm:$0xff]  ;;  %v3921_v55 = vld [vmem:[%s3649_s27 + $0x98] sm:$0xff] }
  0x34   : > { %3073 = vmatprep.mubr.msk.f32.mxu0 %vm288_vm0, %v3723_v17  ;;  %v3906_v53 = vld [vmem:[%s3649_s27 + $0x80] sm:$0xff]  ;;  %v3926_v56 = vld [vmem:[%s3649_s27 + $0xa8] sm:$0xff]  ;;  %v3935_v57 = vld [vmem:[%s3649_s27 + $0xb0] sm:$0xff] }
  0x35   : > { %v675_v58 = vld [vmem:[%s3649_s27 + $0x2] sm:$0xff]  ;;  %v676_v59 = vld [vmem:[%s3649_s27 + $0xa] sm:$0xff]  ;;  %v2681_v62 = vld [vmem:[%s3649_s27 + $0xd8] sm:$0xff] }
  0x36   : > { %2956 = vmatmul.mubr.msk.f32.gmra.mrb[8].mxu1 %vm288_vm0, %v3720_v16  ;;  %v3956_v60 = vld [vmem:[%s3649_s27 + $0xc0] sm:$0xff]  ;;  %v2680_v61 = vld [vmem:[%s3649_s27 + $0xc8] sm:$0xff] }
  0x37   : > { %3074 = vmatmul.mubr.msk.f32.vlgmr.msra.gmra.mrb[0].mxu0 %vm288_vm0, %v3734_v18  ;;  %2958 = vmatprep.mubr.msk.f32.mxu1 %vm288_vm0, %v3737_v19  ;;  %v2682_v63 = vld [vmem:[%s3649_s27 + $0xe0] sm:$0xff]  ;;  %v2713_v1 = vld [vmem:[%s3649_s27 + $0xc9] sm:$0xff] }
  0x38   : > { %3098 = vmatpush3.msra.mxu0 %v2683_v10  ;;  %3076 = vmatprep.mubr.msk.f32.mxu0 %vm288_vm0, %v3740_v20  ;;  %v2712_v0 = vld [vmem:[%s3649_s27 + $0xc1] sm:$0xff] }
  0x39   : > { %3123 = vmatprep.subr.mxu0 %v3747_v21  ;;  %v2715_v3 = vld [vmem:[%s3649_s27 + $0xe1] sm:$0xff] }
  0x3a   : > { %2959 = vmatmul.mubr.msk.f32.gmra.mrb[10].mxu1 %vm288_vm0, %v3754_v22  ;;  %v2747_v4 = vld [vmem:[%s3649_s27 + $0xda] sm:$0xff]  ;;  %v2748_v5 = vld [vmem:[%s3649_s27 + $0xe2] sm:$0xff] }
  0x3b   : > { %3077 = vmatmul.mubr.msk.f32.gmra.mrb[2].mxu0 %vm288_vm0, %v3759_v23  ;;  %2961 = vmatprep.mubr.msk.f32.mxu1 %vm288_vm0, %v3762_v24 }
  0x3c   : > { %3079 = vmatprep.mubr.msk.f32.mxu0 %vm288_vm0, %v3765_v25 }
  0x3e   : > { %2962 = vmatmul.mubr.msk.f32.gmra.mrb[12].mxu1 %vm288_vm0, %v3775_v26 }
  0x3f   : > { %3080 = vmatmul.mubr.msk.f32.gmra.mrb[4].mxu0 %vm288_vm0, %v3780_v27  ;;  %2964 = vmatprep.mubr.msk.f32.mxu1 %vm288_vm0, %v3783_v28 }
  0x40   : > { %3082 = vmatprep.mubr.msk.f32.mxu0 %vm288_vm0, %v3786_v29 }
  0x42   : > { %2965 = vmatmul.mubr.msk.f32.gmra.mrb[14].mxu1 %vm288_vm0, %v3795_v30 }
  0x43   : > { %3083 = vmatmul.mubr.msk.f32.gmra.mrb[6].mxu0 %vm288_vm0, %v3800_v31  ;;  %2969 = vmatprep.mubr.msk.f32.mxu1 %vm288_vm0, %v253_v32 }
  0x44   : > { %3085 = vmatprep.mubr.msk.f32.mxu0 %vm288_vm0, %v3804_v33 }
  0x46   : > { %2970 = vmatmul.mubr.msk.f32.vlgmr.msra.gmra.mrb[0].mxu1 %vm288_vm0, %v254_v34 }
  0x47   : > { %3086 = vmatmul.mubr.msk.f32.gmra.mrb[8].mxu0 %vm288_vm0, %v3815_v35  ;;  %2994 = vmatpush3.msra.mxu1 %v2551_v14 }
  0x48   : > { %2972 = vmatprep.mubr.msk.f32.mxu1 %vm288_vm0, %v3818_v36  ;;  %3088 = vmatprep.mubr.msk.f32.mxu0 %vm288_vm0, %v3821_v37 }
  0x49   : > { %3019 = vmatprep.subr.mxu1 %v2584_v38 }
  0x4a   : > { %2973 = vmatmul.mubr.msk.f32.gmra.mrb[2].mxu1 %vm288_vm0, %v3830_v39 }
  0x4b   : > { %3089 = vmatmul.mubr.msk.f32.gmra.mrb[10].mxu0 %vm288_vm0, %v3837_v40  ;;  %2975 = vmatprep.mubr.msk.f32.mxu1 %vm288_vm0, %v3840_v41 }
  0x4c   : > { %3091 = vmatprep.mubr.msk.f32.mxu0 %vm288_vm0, %v3843_v42 }
  0x4e   : > { %2976 = vmatmul.mubr.msk.f32.gmra.mrb[4].mxu1 %vm288_vm0, %v3852_v43 }
  0x4f   : > { %3092 = vmatmul.mubr.msk.f32.gmra.mrb[12].mxu0 %vm288_vm0, %v3857_v44  ;;  %2978 = vmatprep.mubr.msk.f32.mxu1 %vm288_vm0, %v3860_v45 }
  0x50   : > { %3094 = vmatprep.mubr.msk.f32.mxu0 %vm288_vm0, %v3863_v46 }
  0x52   : > { %2979 = vmatmul.mubr.msk.f32.gmra.mrb[6].mxu1 %vm288_vm0, %v3872_v47 }
  0x53   : > { %3095 = vmatmul.mubr.msk.f32.gmra.mrb[14].mxu0 %vm288_vm0, %v3877_v48  ;;  %2981 = vmatprep.mubr.msk.f32.mxu1 %vm288_vm0, %v3880_v49 }
  0x54   : > { %3099 = vmatprep.mubr.msk.f32.mxu0 %vm288_vm0, %v3840_v41 }
  0x56   : > { %2982 = vmatmul.mubr.msk.f32.gmra.mrb[8].mxu1 %vm288_vm0, %v3889_v50 }
  0x57   : > { %3100 = vmatmul.mubr.msk.f32.vlgmr.msra.gmra.mrb[0].mxu0 %vm288_vm0, %v3852_v43  ;;  %2984 = vmatprep.mubr.msk.f32.mxu1 %vm288_vm0, %v3894_v51 }
  0x58   : > { %3124 = vmatpush3.msra.mxu0 %v3747_v21  ;;  %3102 = vmatprep.mubr.msk.f32.mxu0 %vm288_vm0, %v3860_v45 }
  0x59   : > { %3149 = vmatprep.subr.mxu0 %v2749_v52 }
  0x5a   : > { %2985 = vmatmul.mubr.msk.f32.gmra.mrb[10].mxu1 %vm288_vm0, %v3906_v53 }
  0x5b   : > { %3103 = vmatmul.mubr.msk.f32.gmra.mrb[2].mxu0 %vm288_vm0, %v3872_v47  ;;  %2987 = vmatprep.mubr.msk.f32.mxu1 %vm288_vm0, %v3912_v54 }
  0x5c   : > { %3105 = vmatprep.mubr.msk.f32.mxu0 %vm288_vm0, %v3880_v49 }
  0x5e   : > { %2988 = vmatmul.mubr.msk.f32.gmra.mrb[12].mxu1 %vm288_vm0, %v3921_v55 }
  0x5f   : > { %3106 = vmatmul.mubr.msk.f32.gmra.mrb[4].mxu0 %vm288_vm0, %v3889_v50  ;;  %2990 = vmatprep.mubr.msk.f32.mxu1 %vm288_vm0, %v3926_v56 }
  0x60   : > { %3108 = vmatprep.mubr.msk.f32.mxu0 %vm288_vm0, %v3894_v51 }
  0x62   : > { %2991 = vmatmul.mubr.msk.f32.gmra.mrb[14].mxu1 %vm288_vm0, %v3935_v57 }
  0x63   : > { %3109 = vmatmul.mubr.msk.f32.gmra.mrb[6].mxu0 %vm288_vm0, %v3906_v53  ;;  %2995 = vmatprep.mubr.msk.f32.mxu1 %vm288_vm0, %v675_v58 }
  0x64   : > { %3111 = vmatprep.mubr.msk.f32.mxu0 %vm288_vm0, %v3912_v54 }
  0x66   : > { %2996 = vmatmul.mubr.msk.f32.vlgmr.msra.gmra.mrb[0].mxu1 %vm288_vm0, %v676_v59 }
  0x67   : > { %3112 = vmatmul.mubr.msk.f32.gmra.mrb[8].mxu0 %vm288_vm0, %v3921_v55  ;;  %3020 = vmatpush3.msra.mxu1 %v2584_v38 }
  0x68   : > { %2998 = vmatprep.mubr.msk.f32.mxu1 %vm288_vm0, %v3723_v17  ;;  %3114 = vmatprep.mubr.msk.f32.mxu0 %vm288_vm0, %v3926_v56 }
  0x69   : > { %3234 = vmatprep.subr.mxu1 %v3662_v2 }
  0x6a   : > { %2999 = vmatmul.mubr.msk.f32.gmra.mrb[2].mxu1 %vm288_vm0, %v3734_v18 }
  0x6b   : > { %3115 = vmatmul.mubr.msk.f32.gmra.mrb[10].mxu0 %vm288_vm0, %v3935_v57  ;;  %3001 = vmatprep.mubr.msk.f32.mxu1 %vm288_vm0, %v3740_v20 }
  0x6c   : > { %3117 = vmatprep.mubr.msk.f32.mxu0 %vm288_vm0, %v3956_v60 }
  0x6e   : > { %3002 = vmatmul.mubr.msk.f32.gmra.mrb[4].mxu1 %vm288_vm0, %v3759_v23 }
  0x6f   : > { %3118 = vmatmul.mubr.msk.f32.gmra.mrb[12].mxu0 %vm288_vm0, %v2680_v61  ;;  %3004 = vmatprep.mubr.msk.f32.mxu1 %vm288_vm0, %v3765_v25 }
  0x70   : > { %3120 = vmatprep.mubr.msk.f32.mxu0 %vm288_vm0, %v2681_v62 }
  0x72   : > { %3005 = vmatmul.mubr.msk.f32.gmra.mrb[6].mxu1 %vm288_vm0, %v3780_v27 }
  0x73   : > { %3121 = vmatmul.mubr.msk.f32.gmra.mrb[14].mxu0 %vm288_vm0, %v2682_v63  ;;  %3007 = vmatprep.mubr.msk.f32.mxu1 %vm288_vm0, %v3786_v29 }
  0x74   : > { %3125 = vmatprep.mubr.msk.f32.mxu0 %vm288_vm0, %v3680_v9 }
  0x76   : > { %3008 = vmatmul.mubr.msk.f32.gmra.mrb[8].mxu1 %vm288_vm0, %v3800_v31 }
  0x77   : > { %3126 = vmatmul.mubr.msk.f32.vlgmr.msra.gmra.mrb[0].mxu0 %vm288_vm0, %v3687_v11  ;;  %3010 = vmatprep.mubr.msk.f32.mxu1 %vm288_vm0, %v3804_v33 }
  0x78   : > { %3150 = vmatpush3.msra.mxu0 %v2749_v52  ;;  %3128 = vmatprep.mubr.msk.f32.mxu0 %vm288_vm0, %v3693_v12 }
  0x7a   : > { %3011 = vmatmul.mubr.msk.f32.gmra.mrb[10].mxu1 %vm288_vm0, %v3815_v35 }
  0x7b   : > { %3129 = vmatmul.mubr.msk.f32.gmra.mrb[2].mxu0 %vm288_vm0, %v3703_v13  ;;  %3013 = vmatprep.mubr.msk.f32.mxu1 %vm288_vm0, %v3821_v37 }
  0x7c   : > { %3131 = vmatprep.mubr.msk.f32.mxu0 %vm288_vm0, %v3709_v15  ;;  %v4108_v15 = vld [vmem:[%s4235_s2] ss:$0 sm:$0xff] }
  0x7e   : > { %3014 = vmatmul.mubr.msk.f32.gmra.mrb[12].mxu1 %vm288_vm0, %v3837_v40 }
  0x7f   : > { %3132 = vmatmul.mubr.msk.f32.gmra.mrb[4].mxu0 %vm288_vm0, %v3720_v16  ;;  %3016 = vmatprep.mubr.msk.f32.mxu1 %vm288_vm0, %v3843_v42 }
  0x80   : > { %3134 = vmatprep.mubr.msk.f32.mxu0 %vm288_vm0, %v3737_v19 }
  0x82   : > { %3017 = vmatmul.mubr.msk.f32.gmra.mrb[14].mxu1 %vm288_vm0, %v3857_v44 }
  0x83   : > { %3135 = vmatmul.mubr.msk.f32.gmra.mrb[6].mxu0 %vm288_vm0, %v3754_v22  ;;  %3021 = vmatprep.mubr.msk.f32.mxu1 %vm288_vm0, %v3818_v36 }
  0x84   : > { %3137 = vmatprep.mubr.msk.f32.mxu0 %vm288_vm0, %v3762_v24 }
  0x86   : > { %3022 = vmatmul.mubr.msk.f32.vlgmr.msra.gmra.mrb[0].mxu1 %vm288_vm0, %v3830_v39 }
  0x87   : > { %3138 = vmatmul.mubr.msk.f32.gmra.mrb[8].mxu0 %vm288_vm0, %v3775_v26  ;;  %3235 = vmatpush3.msra.mxu1 %v3662_v2  ;;  %v2714_v2 = vld [vmem:[%s3649_s27 + $0xd9] sm:$0xff] }
  0x88   : > { %3024 = vmatprep.mubr.msk.f32.mxu1 %vm288_vm0, %v3840_v41  ;;  %3140 = vmatprep.mubr.msk.f32.mxu0 %vm288_vm0, %v3783_v28 }
  0x8a   : > { %3025 = vmatmul.mubr.msk.f32.gmra.mrb[2].mxu1 %vm288_vm0, %v3852_v43 }
  0x8b   : > { %3141 = vmatmul.mubr.msk.f32.gmra.mrb[10].mxu0 %vm288_vm0, %v3795_v30  ;;  %3027 = vmatprep.mubr.msk.f32.mxu1 %vm288_vm0, %v3860_v45 }
  0x8c   : > { %3143 = vmatprep.mubr.msk.f32.mxu0 %vm288_vm0, %v2712_v0 }
  0x8e   : > { %3028 = vmatmul.mubr.msk.f32.gmra.mrb[4].mxu1 %vm288_vm0, %v3872_v47 }
  0x8f   : > { %3144 = vmatmul.mubr.msk.f32.gmra.mrb[12].mxu0 %vm288_vm0, %v2713_v1  ;;  %3030 = vmatprep.mubr.msk.f32.mxu1 %vm288_vm0, %v3880_v49 }
  0x90   : > { %3146 = vmatprep.mubr.msk.f32.mxu0 %vm288_vm0, %v2714_v2 }
  0x92   : > { %3031 = vmatmul.mubr.msk.f32.gmra.mrb[6].mxu1 %vm288_vm0, %v3889_v50 }
  0x93   : > { %3147 = vmatmul.mubr.msk.f32.gmra.mrb[14].mxu0 %vm288_vm0, %v2715_v3  ;;  %3033 = vmatprep.mubr.msk.f32.mxu1 %vm288_vm0, %v3894_v51 }
  0x94   : > { %3151 = vmatprep.mubr.msk.f32.mxu0 %vm288_vm0, %v3740_v20 }
  0x96   : > { %3034 = vmatmul.mubr.msk.f32.gmra.mrb[8].mxu1 %vm288_vm0, %v3906_v53 }
  0x97   : > { %3152 = vmatmul.mubr.msk.f32.vlgmr.msra.gmra.mrb[0].mxu0 %vm288_vm0, %v3759_v23  ;;  %3036 = vmatprep.mubr.msk.f32.mxu1 %vm288_vm0, %v3912_v54 }
  0x98   : > { %3154 = vmatprep.mubr.msk.f32.mxu0 %vm288_vm0, %v3765_v25 }
  0x9a   : > { %3037 = vmatmul.mubr.msk.f32.gmra.mrb[10].mxu1 %vm288_vm0, %v3921_v55 }
  0x9b   : > { %3155 = vmatmul.mubr.msk.f32.gmra.mrb[2].mxu0 %vm288_vm0, %v3780_v27  ;;  %3039 = vmatprep.mubr.msk.f32.mxu1 %vm288_vm0, %v3926_v56 }
  0x9c   : > { %3157 = vmatprep.mubr.msk.f32.mxu0 %vm288_vm0, %v3786_v29 }
  0x9e   : > { %3040 = vmatmul.mubr.msk.f32.gmra.mrb[12].mxu1 %vm288_vm0, %v3935_v57 }
  0x9f   : > { %3158 = vmatmul.mubr.msk.f32.gmra.mrb[4].mxu0 %vm288_vm0, %v3800_v31  ;;  %3042 = vmatprep.mubr.msk.f32.mxu1 %vm288_vm0, %v3956_v60 }
  0xa0   : > { %3160 = vmatprep.mubr.msk.f32.mxu0 %vm288_vm0, %v3804_v33 }
  0xa2   : > { %3043 = vmatmul.mubr.msk.f32.gmra.mrb[14].mxu1 %vm288_vm0, %v2680_v61 }
  0xa3   : > { %3161 = vmatmul.mubr.msk.f32.gmra.mrb[6].mxu0 %vm288_vm0, %v3815_v35  ;;  %3059 = vmatprep.mubr.msk.f32.mxu1 %vm288_vm0, %v3737_v19 }
  0xa4   : > { %3163 = vmatprep.mubr.msk.f32.mxu0 %vm288_vm0, %v3821_v37 }
  0xa6   : > { %3060 = vmatmul.mubr.msk.f32.vlgmr.msra.gmra.mrb[8].mxu1 %vm288_vm0, %v3754_v22 }
  0xa7   : > { %3164 = vmatmul.mubr.msk.f32.gmra.mrb[8].mxu0 %vm288_vm0, %v3837_v40  ;;  %3062 = vmatprep.mubr.msk.f32.mxu1 %vm288_vm0, %v3762_v24 }
  0xa8   : > { %3166 = vmatprep.mubr.msk.f32.mxu0 %vm288_vm0, %v3843_v42 }
  0xaa   : > { %3063 = vmatmul.mubr.msk.f32.gmra.mrb[10].mxu1 %vm288_vm0, %v3775_v26 }
  0xab   : > { %3167 = vmatmul.mubr.msk.f32.gmra.mrb[10].mxu0 %vm288_vm0, %v3857_v44  ;;  %3065 = vmatprep.mubr.msk.f32.mxu1 %vm288_vm0, %v3783_v28 }
  0xac   : > { %3169 = vmatprep.mubr.msk.f32.mxu0 %vm288_vm0, %v3863_v46 }
  0xae   : > { %3066 = vmatmul.mubr.msk.f32.gmra.mrb[12].mxu1 %vm288_vm0, %v3795_v30 }
  0xaf   : > { %3170 = vmatmul.mubr.msk.f32.gmra.mrb[12].mxu0 %vm288_vm0, %v3877_v48  ;;  %3068 = vmatprep.mubr.msk.f32.mxu1 %vm288_vm0, %v2712_v0 }
  0xb0   : > { %3172 = vmatprep.mubr.msk.f32.mxu0 %vm288_vm0, %v2747_v4 }
  0xb2   : > { %3069 = vmatmul.mubr.msk.f32.gmra.mrb[14].mxu1 %vm288_vm0, %v2713_v1 }
  0xb3   : > { %3173 = vmatmul.mubr.msk.f32.gmra.mrb[14].mxu0 %vm288_vm0, %v2748_v5 }
 0x159   : > { %v3023_v6 = vpop.f32.mrb[0].mxu1 }
 0x15a   : > { %v1035_v7 = vpop.f32.mrb[1].mxu1 }
 0x15d   : > { %v3026_v8 = vpop.f32.mrb[2].mxu1 }
 0x15e   : > { %v1045_v9 = vpop.f32.mrb[3].mxu1 }
 0x161   : > { %v3029_v10 = vpop.f32.mrb[4].mxu1 }
 0x162   : > { %v1055_v11 = vpop.f32.mrb[5].mxu1 }
 0x165   : > { %v3032_v12 = vpop.f32.mrb[6].mxu1 }
 0x166   : > { %v1065_v13 = vpop.f32.mrb[7].mxu1 }
 0x16a   : > { %v3153_v14 = vpop.f32.mrb[0].mxu0 }
 0x16b   : > { %v3236_v16 = vadd.f32 %v3153_v14, %v3023_v6  ;;  %v2171_v17 = vpop.f32.mrb[1].mxu0 }
 0x16c   : > { %v3237_v18 = vadd.f32 %v2171_v17, %v1035_v7 }
 0x16d   : > { %v2274_v19 = vadd.f32 %v3236_v16, %v4108_v15 }
 0x16e   : > { %v2273_v20 = vadd.f32 %v3237_v18, %v4108_v15  ;;  %v3156_v21 = vpop.f32.mrb[2].mxu0 }
 0x16f   : > { %v2290_v22 = vmax.f32 %v2274_v19, 0.0  ;;  %v3238_v23 = vadd.f32 %v3156_v21, %v3026_v8  ;;  %v2181_v24 = vpop.f32.mrb[3].mxu0 }
 0x170   : > { %v2289_v25 = vmax.f32 %v2273_v20, 0.0  ;;  %v3239_v26 = vadd.f32 %v2181_v24, %v1045_v9 }
 0x171   : > { %v2276_v28 = vadd.f32 %v3238_v23, %v4108_v15 }
 0x172   : > { %v2306_v27 = vadd.f32 %v2290_v22, %v2289_v25  ;;  %v2275_v29 = vadd.f32 %v3239_v26, %v4108_v15  ;;  %v3159_v30 = vpop.f32.mrb[4].mxu0 }
 0x173   : > { %v3240_v31 = vadd.f32 %v3159_v30, %v3029_v10  ;;  %v2191_v32 = vpop.f32.mrb[5].mxu0  ;;  %v2292_v35 = vmax.f32 %v2276_v28, 0.0 }
 0x174   : > { %v2291_v33 = vmax.f32 %v2275_v29, 0.0  ;;  %v3241_v34 = vadd.f32 %v2191_v32, %v1055_v11 }
 0x175   : > { %v2278_v37 = vadd.f32 %v3240_v31, %v4108_v15 }
 0x176   : > { %v2307_v36 = vadd.f32 %v2306_v27, %v2291_v33  ;;  %v2277_v38 = vadd.f32 %v3241_v34, %v4108_v15  ;;  %v3162_v39 = vpop.f32.mrb[6].mxu0 }
 0x177   : > { %v3242_v40 = vadd.f32 %v3162_v39, %v3032_v12  ;;  %v2201_v41 = vpop.f32.mrb[7].mxu0  ;;  %v2294_v46 = vmax.f32 %v2278_v37, 0.0 }
 0x178   : > { %v2293_v42 = vmax.f32 %v2277_v38, 0.0  ;;  %v2308_v43 = vadd.f32 %v2307_v36, %v2292_v35  ;;  %v3243_v44 = vadd.f32 %v2201_v41, %v1065_v13 }
 0x179   : > { %v3061_v45 = vpop.f32.mrb[8].mxu1  ;;  %v2280_v48 = vadd.f32 %v3242_v40, %v4108_v15 }
 0x17a   : > { %v2309_v47 = vadd.f32 %v2308_v43, %v2293_v42  ;;  %v2279_v49 = vadd.f32 %v3243_v44, %v4108_v15  ;;  %v3165_v50 = vpop.f32.mrb[8].mxu0  ;;  %v1302_v51 = vpop.f32.mrb[9].mxu1  ;;  %v2305_v44 = vld [vmem:[#allocation2] sm:$0x1] }
 0x17b   : > { %v3244_v52 = vadd.f32 %v3165_v50, %v3061_v45  ;;  %v2211_v53 = vpop.f32.mrb[9].mxu0  ;;  %v2296_v58 = vmax.f32 %v2280_v48, 0.0  ;;  %v2337_v48 = vld [vmem:[%s4236_s3 + $0x10] sm:$0xff] (!%p2767_p1) }
 0x17c   : > { %v2295_v54 = vmax.f32 %v2279_v49, 0.0  ;;  %v2310_v55 = vadd.f32 %v2309_v47, %v2294_v46  ;;  %v3245_v56 = vadd.f32 %v2211_v53, %v1302_v51  ;;  %v2336_v47 = vld [vmem:[%s4236_s3 + $0x8] sm:$0xff] (!%p2767_p1)  ;;  %v3538_v49 = vmov (!%p2767_p1), 0.0|0.0   ;;  %v2338_v51 = vld [vmem:[%s4236_s3 + $0x18] sm:$0xff] (!%p2767_p1) }
 0x17d   : > { %v3064_v57 = vpop.f32.mrb[10].mxu1  ;;  %v2282_v60 = vadd.f32 %v3244_v52, %v4108_v15  ;;  %3210 = vmatprep.subr.bf16.mxu0 (!%p2767_p1), %v3538_v49  ;;  %v3540_v52 = vmov (!%p2767_p1), 0.0   ;;  %v3214_v53 = vpack.c.bf16 (!%p2767_p1), %v2338_v51, %v2337_v48 }
 0x17e   : > { %v2311_v59 = vadd.f32 %v2310_v55, %v2295_v54  ;;  %v2281_v61 = vadd.f32 %v3245_v56, %v4108_v15  ;;  %v3168_v62 = vpop.f32.mrb[10].mxu0  ;;  %v1312_v63 = vpop.f32.mrb[11].mxu1  ;;  %3207 = vmatprep.mubr.msk.f32.mxu0 (!%p2767_p1), %vm3539_vm1, %v3540_v52  ;;  %v2339_v54 = vld [vmem:[%s4236_s3 + $0x20] sm:$0xff] (!%p2767_p1)  ;;  %v2340_v55 = vld [vmem:[%s4236_s3 + $0x28] sm:$0xff] (!%p2767_p1) }
 0x17f   : > { %v3246_v0 = vadd.f32 %v3168_v62, %v3064_v57  ;;  %v2221_v1 = vpop.f32.mrb[11].mxu0  ;;  %v2298_v6 = vmax.f32 %v2282_v60, 0.0  ;;  %v3217_v56 = vpack.c.bf16 (!%p2767_p1), %v2340_v55, %v2339_v54  ;;  %v2341_v57 = vld [vmem:[%s4236_s3 + $0x30] sm:$0xff] (!%p2767_p1)  ;;  %v2343_v60 = vld [vmem:[%s4236_s3 + $0x40] sm:$0xff] (!%p2767_p1) }
 0x180   : > { %v2297_v2 = vmax.f32 %v2281_v61, 0.0  ;;  %v2312_v3 = vadd.f32 %v2311_v59, %v2296_v58  ;;  %v3247_v4 = vadd.f32 %v2221_v1, %v1312_v63  ;;  %v2342_v58 = vld [vmem:[%s4236_s3 + $0x38] sm:$0xff] (!%p2767_p1)  ;;  %v2344_v61 = vld [vmem:[%s4236_s3 + $0x48] sm:$0xff] (!%p2767_p1)  ;;  %v2345_v63 = vld [vmem:[%s4236_s3 + $0x50] sm:$0xff] (!%p2767_p1) }
 0x181   : > { %v3067_v5 = vpop.f32.mrb[12].mxu1  ;;  %v2284_v8 = vadd.f32 %v3246_v0, %v4108_v15  ;;  %v3220_v59 = vpack.c.bf16 (!%p2767_p1), %v2342_v58, %v2341_v57  ;;  %v3223_v62 = vpack.c.bf16 (!%p2767_p1), %v2344_v61, %v2343_v60  ;;  %v2346_v0 = vld [vmem:[%s4236_s3 + $0x58] sm:$0xff] (!%p2767_p1) }
 0x182   : > { %v2313_v7 = vadd.f32 %v2312_v3, %v2297_v2  ;;  %v2283_v9 = vadd.f32 %v3247_v4, %v4108_v15  ;;  %v3171_v10 = vpop.f32.mrb[12].mxu0  ;;  %v1322_v11 = vpop.f32.mrb[13].mxu1  ;;  %v3226_v1 = vpack.c.bf16 (!%p2767_p1), %v2346_v0, %v2345_v63  ;;  %v2347_v2 = vld [vmem:[%s4236_s3 + $0x60] sm:$0xff] (!%p2767_p1)  ;;  %v2348_v3 = vld [vmem:[%s4236_s3 + $0x68] sm:$0xff] (!%p2767_p1) }
 0x183   : > { %v3248_v12 = vadd.f32 %v3171_v10, %v3067_v5  ;;  %v2231_v13 = vpop.f32.mrb[13].mxu0  ;;  %v2300_v19 = vmax.f32 %v2284_v8, 0.0  ;;  %v3229_v4 = vpack.c.bf16 (!%p2767_p1), %v2348_v3, %v2347_v2  ;;  %v2349_v5 = vld [vmem:[%s4236_s3 + $0x70] sm:$0xff] (!%p2767_p1)  ;;  %v2351_v10 = vld [vmem:[%s4237_s4] sm:$0x1] (!%p2767_p1) }
 0x184   : > { %v2299_v14 = vmax.f32 %v2283_v9, 0.0  ;;  %v2314_v16 = vadd.f32 %v2313_v7, %v2298_v6  ;;  %v3249_v17 = vadd.f32 %v2231_v13, %v1322_v11  ;;  %v2350_v6 = vld [vmem:[%s4236_s3 + $0x78] sm:$0xff] (!%p2767_p1) }
 0x185   : > { %v3070_v18 = vpop.f32.mrb[14].mxu1  ;;  %v2286_v21 = vadd.f32 %v3248_v12, %v4108_v15  ;;  %v3232_v7 = vpack.c.bf16 (!%p2767_p1), %v2350_v6, %v2349_v5 }
 0x186   : > { %v2315_v20 = vadd.f32 %v2314_v16, %v2299_v14  ;;  %v2285_v22 = vadd.f32 %v3249_v17, %v4108_v15  ;;  %v3174_v23 = vpop.f32.mrb[14].mxu0  ;;  %v1332_v24 = vpop.f32.mrb[15].mxu1 }
 0x187   : > { %v3250_v25 = vadd.f32 %v3174_v23, %v3070_v18  ;;  %v2241_v26 = vpop.f32.mrb[15].mxu0  ;;  %v2302_v30 = vmax.f32 %v2286_v21, 0.0 }
 0x188   : > { %v2301_v27 = vmax.f32 %v2285_v22, 0.0  ;;  %v2316_v28 = vadd.f32 %v2315_v20, %v2300_v19  ;;  %v3251_v29 = vadd.f32 %v2241_v26, %v1332_v24 }
 0x189   : > { %v2288_v32 = vadd.f32 %v3250_v25, %v4108_v15 }
 0x18a   : > { %v2317_v31 = vadd.f32 %v2316_v28, %v2301_v27  ;;  %v2287_v33 = vadd.f32 %v3251_v29, %v4108_v15  ;;  %v2335_v15 = vld [vmem:[%s4236_s3] sm:$0xff] (!%p2767_p1) }
 0x18b   : > { %v2304_v36 = vmax.f32 %v2288_v32, 0.0  ;;  %v3211_v50 = vpack.c.bf16 (!%p2767_p1), %v2336_v47, %v2335_v15 }
 0x18c   : > { %v2303_v34 = vmax.f32 %v2287_v33, 0.0  ;;  %v2318_v35 = vadd.f32 %v2317_v31, %v2302_v30 }
 0x18d   : > { %3212 = vmatpush3.bf16.msra.mxu0 (!%p2767_p1), %v3211_v50 }
 0x18e   : > { %v2319_v37 = vadd.f32 %v2318_v35, %v2303_v34  ;;  %3213 = vmatprep.subr.bf16.mxu0 (!%p2767_p1), %v3538_v49 }
 0x190   : > { %v2320_v38 = vadd.f32 %v2319_v37, %v2304_v36 }
 0x191   : > { %3215 = vmatpush3.bf16.msra.mxu0 (!%p2767_p1), %v3214_v53 }
 0x192   : > { %v2321_v39 = vrot.slane %v2320_v38, 4  ;;  %3216 = vmatprep.subr.bf16.mxu0 (!%p2767_p1), %v3538_v49 }
 0x194   : > { %v2322_v40 = vadd.f32 %v2321_v39, %v2320_v38 }
 0x195   : > { %3218 = vmatpush3.bf16.msra.mxu0 (!%p2767_p1), %v3217_v56 }
 0x196   : > { %v2323_v41 = vrot.slane %v2322_v40, 2  ;;  %3219 = vmatprep.subr.bf16.mxu0 (!%p2767_p1), %v3538_v49 }
 0x198   : > { %v2324_v42 = vadd.f32 %v2323_v41, %v2322_v40 }
 0x199   : > { %3221 = vmatpush3.bf16.msra.mxu0 (!%p2767_p1), %v3220_v59 }
 0x19a   : > { %v2325_v43 = vrot.slane %v2324_v42, 1  ;;  %2332 = sbr.rel (%p2767_p1) target bundleno = 643 (0x283), region = 48  ;;  %3222 = vmatprep.subr.bf16.mxu0 (!%p2767_p1), %v3538_v49 }
 0x19c   : > { %v2326_v45 = vadd.f32 %v2325_v43, %v2324_v42 }
 0x19d   : > { %3224 = vmatpush3.bf16.msra.mxu0 (!%p2767_p1), %v3223_v62 }
 0x19e   : > { %v2327_v46 = vadd.f32 %v2326_v45, %v2305_v44  ;;  %3225 = vmatprep.subr.bf16.mxu0 (!%p2767_p1), %v3538_v49 }
 0x1a0   : > { %2328 = vst [vmem:[#allocation2] sm:$0x1] %v2327_v46 }
 0x1a1   : > { %3227 = vmatpush3.bf16.msra.mxu0 %v3226_v1 }
 0x1a2   : > { %3228 = vmatprep.subr.bf16.mxu0 %v3538_v49 }
 0x1a5   : > { %3230 = vmatpush3.bf16.msra.mxu0 %v3229_v4 }
 0x1a6   : > { %3231 = vmatprep.subr.bf16.mxu0 %v3538_v49 }
 0x1a7   : > { %v2333_v8 = vld [vmem:[#allocation2] sm:$0x1] }
 0x1a8   : > { %v2334_v9 = vmul.f32 0.00390625, %v2333_v8 }
 0x1a9   : > { %3233 = vmatpush3.bf16.msra.mxu0 %v3232_v7 }
 0x1ac   : > { %3208 = vmatmul.mubr.f32.vlgmr.msra.gmra.mrb[0].mxu0 %v2334_v9 }
 0x27f   : > { %v2418_v11 = vpop.f32.mrb[0].mxu0 }
 0x280   : > { %v2419_v12 = vadd.f32 %v2418_v11, %v2351_v10  ;;  %v3209_v13 = vpop.f32.mrb[1].mxu0 }
 0x282   : > { %2422 = vst [vmem:[%s3653_s7] sm:$0x1] %v2419_v12 }
 0x283 PF: > { %s2768_s16 = sshll.u32 %s3523_s22, 4  ;;  %s2436_s8 = sshll.u32 %s3653_s7, 4  ;;  %s2437_s8 = int_to_ptr.vmem [resolvable:$true] %s2436_s8 }
 0x284   : > { %s4183_s26 = scalar_lea.hbm %s4238_s5, %s2768_s16  ;;  %s2424_s11 = scalar_lea.sflag [#allocation4], %s237_s10 }
 0x285   : > { %s3441_s12 = scalar_lea.vmem %s2437_s8, 16  ;;  %s3541_s13 = smov [#allocation3]  }
 0x286   : > { %p3442_p2 = scmp.ne.s32.totalorder %s2437_s8, %s3441_s12  ;;  %s3445_s29 = sshll.u32 %s3541_s13, 4  ;;  %s3446_s29 = int_to_ptr.vmem [resolvable:$false] %s3445_s29 }
 0x287   : > { %s3447_s14 = scalar_lea.vmem %s3446_s29, 32  ;;  %p3448_p6 = scmp.lt.s32.totalorder %s2437_s8, %s3446_s29 }
 0x288   : > { %p3443_p4 = pnand %p3442_p2, %p3621_p3  ;;  %p3449_p7 = scmp.lt.s32.totalorder %s3447_s14, %s3441_s12 }
 0x28a   : > { %p3444_p5 = pneg %p3443_p4  ;;  %p3450_p8 = por %p3449_p7, %p3448_p6 }
 0x28c   : > { %p3451_p10 = pnand %p3450_p8, %p3444_p5 }
 0x28e   : > { %3454 = shalt.err (!%p3451_p10)
}
 0x28f   : > { %s3455_s22 = scalar_lea.hbm %s4183_s26, 16  ;;  %s3459_s21 = scalar_lea.hbm %s4238_s5, 32 }
 0x290   : > { %p3456_p11 = scmp.ne.s32.totalorder %s4183_s26, %s3455_s22  ;;  %p3460_p0 = scmp.lt.u32.totalorder %s4183_s26, %s4238_s5 }
 0x291   : > { %p3461_p1 = scmp.lt.u32.totalorder %s3459_s21, %s3455_s22  ;;  %p3463_p4 = scmp.lt.u32.totalorder %s3455_s22, %s4183_s26 }
 0x292   : > { %p3457_p12 = pnand %p3456_p11, %p3621_p3 }
 0x293   : > { %p3462_p2 = por %p3461_p1, %p3460_p0 }
 0x294   : > { %p3458_p13 = pneg %p3457_p12 }
 0x295   : > { %p3464_p5 = por %p3463_p4, %p3462_p2 }
 0x297   : > { %p3465_p6 = pnand %p3464_p5, %p3458_p13 }
 0x299   : > { %3468 = shalt.err (!%p3465_p6)
}
 0x29a   : > { %3366 = dma.vmem_to_hbm [thread:$0]  (%p3621_p3), %s2437_s8, 16, %s4183_s26, %s2424_s11  }
 0x29b PF: > { %p3372_p7 = scmp.ge.s32.totalorder %s3535_s25, 2  ;;  %s2448_s17 = sand.u32 1, %s3507_s18  }
 0x29c   : > { %s2449_s27 = scalar_lea.sflag [#allocation4], %s2448_s17 }
 0x29d   : > { %p3369_p8 = pnand %p3372_p7, %p3631_p9 }
 0x29f   : > { %3502 = dma.done.wait (!%p3369_p8), %s2449_s27, 16  }
 0x2a0   : > { %3504 = vsyncadd (!%p3369_p8), %s2449_s27, 4294967280  ;;  %s18_s25 = sadd.s32 1, %s3535_s25   ;;  %s4243_s30 = sld [smem:[#allocation6_spill]] }
 0x2a1   : > { %p15_p10 = scmp.ge.s32.totalorder %s18_s25, 6   ;;  %s4244_s18 = smov %s3511_s19 }
 0x2a2   : > { %s4245_s19 = smov %s3515_s20  ;;  %s4246_s20 = smov %s3639_s9 }
 0x2a3   : > { %s4247_s21 = smov %s3527_s23  ;;  %s4248_s22 = smov %s3531_s24 }
 0x2a4   : > { %s4249_s23 = smov %s4252_s28  ;;  %17 = sbr.rel (!%p15_p10) target bundleno = 5 (0x5), region = 93 }
 0x2a6   : > { %s4250_s24 = smov %s4243_s30 }
 0x2ab   :  { %2453 = vsyncpa [#allocation4], 1 }
 0x2ac   :  { %2455 = vsyncpa [#allocation4 + $0x1], 1 }

</bundles_post_ra>
